<compile_context>
chip_gen: v7x
topology: tpu7x:2x2x1
jax: 0.10.0
libtpu: 0.0.40
codegen_flags: <defaults>
</compile_context>

<pallas_src>
import functools

import jax
import jax.numpy as jnp
from jax.experimental import pallas as pl
from jax.experimental.pallas import tpu as pltpu


def _phi_kernel(psi_inv_ref, theta_ref, psi_ref, phi_ref):
    """phi = (Psi^-1 @ diag(theta)) @ Psi, computed once (batch-invariant)."""
    rescaled = psi_inv_ref[...] * theta_ref[...]                 # (n_col, n_row)
    phi = jnp.dot(rescaled, psi_ref[...],
                  preferred_element_type=jnp.float32)            # (n_col, n_col)
    phi_ref[...] = phi.astype(phi_ref.dtype)


def _gwl_kernel(*refs, p_drop, din_first):
    """One grid step: TB batch elements, lane-dense padded output."""
    if 0.0 < p_drop < 1.0:
        phi_ref, x_ref, w_ref, rand_ref, o_ref = refs
    else:
        phi_ref, x_ref, w_ref, o_ref = refs
        rand_ref = None

    tb, n, din = x_ref.shape
    d_pad = w_ref.shape[1]

    # Broadcast phi over the batch block -> one batched MXU matmul per step.
    phi_b = jnp.broadcast_to(phi_ref[...], (tb, n, n))

    if din_first:
        # (phi @ x) @ W  -- cheaper when Din <= Dout (N^2 contraction over Din).
        loc = jnp.einsum('bnm,bmd->bnd', phi_b, x_ref[...],
                         preferred_element_type=jnp.float32)     # (tb, n, din)
        y = jnp.dot(loc.reshape(tb * n, din).astype(w_ref.dtype), w_ref[...],
                    preferred_element_type=jnp.float32)          # (tb*n, d_pad)
        y = y.reshape(tb, n, d_pad)
    else:
        # phi @ (x @ W)  -- cheaper when Dout < Din.
        xw = jnp.dot(x_ref[...].reshape(tb * n, din), w_ref[...],
                     preferred_element_type=jnp.float32)         # (tb*n, d_pad)
        xw = xw.reshape(tb, n, d_pad).astype(phi_ref.dtype)
        y = jnp.einsum('bnm,bmd->bnd', phi_b, xw,
                       preferred_element_type=jnp.float32)       # (tb, n, d_pad)

    # leaky_relu(negative_slope=0.2), f32 on the VPU.
    y = jnp.where(y >= 0.0, y, jnp.float32(0.2) * y)

    # F.dropout(p) with training=True semantics.
    if p_drop >= 1.0:
        y = jnp.zeros_like(y)
    elif p_drop > 0.0:
        keep = rand_ref[...] >= jnp.float32(p_drop)
        y = jnp.where(keep, y * jnp.float32(1.0 / (1.0 - p_drop)), 0.0)

    o_ref[...] = y.astype(o_ref.dtype)


def graph_wavelet_layer(wav_idx, wav_val, wav_inv_idx, wav_inv_val,
                        x_features, weight_matrix, theta, *,
                        wavelets_shape, dropout, rng_key=None):
    n_row, n_col = wavelets_shape
    p_drop = float(dropout)
    if not 0.0 <= p_drop <= 1.0:
        raise ValueError(f"dropout must be in [0, 1], got {dropout}")

    B, N, Din = x_features.shape
    if N != n_col:
        raise ValueError("x_features node dim must equal wavelets_col")
    Dout = weight_matrix.shape[1]

    # --- glue: densify the sparse wavelet matrices (spspmm inputs) ---
    # TODO(synk): for very large graphs keep Psi / Psi^-1 sparse (gather DMA)
    # instead of densifying to O(N^2).
    psi = (jnp.zeros((n_row, n_col), jnp.float32)
           .at[wav_idx[0], wav_idx[1]].add(wav_val.astype(jnp.float32)))
    psi_inv = (jnp.zeros((n_col, n_row), jnp.float32)
               .at[wav_inv_idx[0], wav_inv_idx[1]].add(
                   wav_inv_val.astype(jnp.float32)))
    theta_row = theta.reshape(1, n_row).astype(jnp.float32)

    # --- batch-invariant phi, computed once (hoisted out of the batch grid) ---
    # TODO(synk): tile this kernel over n_col for graphs where 3*N^2 f32 no
    # longer fits VMEM (relevant on v7x's 64 MiB around N~2K).
    phi = pl.pallas_call(
        _phi_kernel,
        out_shape=jax.ShapeDtypeStruct((n_col, n_col), jnp.bfloat16),
    )(psi_inv, theta_row, psi)

    # --- lane-dense padding of the output feature dim (multiple of 128) ---
    d_pad = ((Dout + 127) // 128) * 128
    w_p = jnp.pad(weight_matrix.astype(jnp.bfloat16),
                  ((0, 0), (0, d_pad - Dout)))
    x_bf = x_features.astype(jnp.bfloat16)

    # --- batch blocking: TB batch elements per grid step (TB*N rows of M) ---
    cap = max(1, 512 // max(1, N))
    tb = 1
    for d in range(min(B, cap), 0, -1):
        if B % d == 0:
            tb = d
            break

    use_rand = 0.0 < p_drop < 1.0
    inputs = [phi, x_bf, w_p]
    in_specs = [
        pl.BlockSpec((n_col, n_col), lambda i: (0, 0)),      # phi (resident)
        pl.BlockSpec((tb, N, Din), lambda i: (i, 0, 0)),     # x batch block
        pl.BlockSpec((Din, d_pad), lambda i: (0, 0)),        # padded weights
    ]
    if use_rand:
        if rng_key is None:
            rng_key = jax.random.PRNGKey(0)
        # NOTE: pass a fresh rng_key each call to get a fresh dropout mask.
        rand = jax.random.uniform(rng_key, (B, N, d_pad), jnp.float32)
        inputs.append(rand)
        in_specs.append(pl.BlockSpec((tb, N, d_pad), lambda i: (i, 0, 0)))
    out_specs = pl.BlockSpec((tb, N, d_pad), lambda i: (i, 0, 0))

    din_first = Din <= Dout
    if din_first:
        flops = 2 * B * N * N * Din + 2 * B * N * Din * d_pad
    else:
        flops = 2 * B * N * Din * d_pad + 2 * B * N * N * d_pad
    bytes_accessed = (phi.size * 2 + x_bf.size * 2 + w_p.size * 2
                      + (B * N * d_pad * 4 if use_rand else 0)
                      + B * N * d_pad * 4)
    cost = pl.CostEstimate(flops=int(flops), transcendentals=0,
                           bytes_accessed=int(bytes_accessed))

    kernel = functools.partial(_gwl_kernel, p_drop=p_drop, din_first=din_first)
    out_padded = pl.pallas_call(
        kernel,
        out_shape=jax.ShapeDtypeStruct((B, N, d_pad), jnp.float32),
        grid_spec=pltpu.PrefetchScalarGridSpec(
            num_scalar_prefetch=0,
            grid=(B // tb,),
            in_specs=in_specs,
            out_specs=out_specs,
        ),
        compiler_params=pltpu.CompilerParams(
            dimension_semantics=("parallel",),   # independent batch blocks
            vmem_limit_bytes=64 * 1024 * 1024,
        ),
        cost_estimate=cost,
    )(*inputs)

    return out_padded[..., :Dout]


if __name__ == "__main__":
    key = jax.random.PRNGKey(0)
    B, N, Din, Dout = 2, 16, 8, 32
    wavelets_shape = (N, N)          # (wavelets_row, wavelets_col)
    dropout = 0.25

    k1, k2, k3, k4, k5, k6 = jax.random.split(key, 6)

    # Synthetic sparse wavelet matrices: identity + small off-diagonal band.
    diag_r = jnp.arange(N, dtype=jnp.int32)
    off_r = jnp.arange(N, dtype=jnp.int32)
    off_c = (off_r + 1) % N
    wav_idx = jnp.stack([jnp.concatenate([diag_r, off_r]),
                         jnp.concatenate([diag_r, off_c])])
    wav_val = jnp.concatenate(
        [jnp.ones((N,), jnp.float32),
         0.1 * jax.random.uniform(k1, (N,), jnp.float32)])
    wav_inv_idx = jnp.stack([jnp.concatenate([diag_r, off_c]),
                             jnp.concatenate([diag_r, off_r])])
    wav_inv_val = jnp.concatenate(
        [jnp.ones((N,), jnp.float32),
         -0.1 * jax.random.uniform(k2, (N,), jnp.float32)])

    x_features = jax.random.normal(k3, (B, N, Din), jnp.float32)

    # Deterministic parameter init matching the module's __init__:
    #  - weight_matrix: xavier_uniform
    #  - diagonal_weight_filter: uniform(0.9, 1.1)
    bound = (6.0 / (Din + Dout)) ** 0.5
    weight_matrix = jax.random.uniform(k4, (Din, Dout), jnp.float32,
                                       -bound, bound)
    theta = jax.random.uniform(k5, (N, 1), jnp.float32, 0.9, 1.1)

    out = graph_wavelet_layer(
        wav_idx, wav_val, wav_inv_idx, wav_inv_val,
        x_features, weight_matrix, theta,
        wavelets_shape=wavelets_shape, dropout=dropout, rng_key=k6)
    jax.block_until_ready(out)
    assert out.shape == (B, N, Dout)
    print("KERNEL_OK")
</pallas_src>

<mosaic_0001>
module attributes {stable_mosaic.version = 11 : i64} {
  func.func @_phi_kernel(%arg0: memref<16x16xf32, #tpu.memory_space<vmem>>, %arg1: memref<1x16xf32, #tpu.memory_space<vmem>>, %arg2: memref<16x16xf32, #tpu.memory_space<vmem>>, %arg3: memref<16x16xbf16, #tpu.memory_space<vmem>>) attributes {dimension_semantics = [], scalar_prefetch = 0 : i64, scratch_operands = 0 : i64, tpu.core_type = #tpu.core_type<tc>} {
    %c0 = arith.constant 0 : index
    %c0_0 = arith.constant 0 : index
    %0 = vector.load %arg0[%c0, %c0_0] : memref<16x16xf32, #tpu.memory_space<vmem>>, vector<16x16xf32>
    %c0_1 = arith.constant 0 : index
    %c0_2 = arith.constant 0 : index
    %1 = vector.load %arg1[%c0_1, %c0_2] : memref<1x16xf32, #tpu.memory_space<vmem>>, vector<1x16xf32>
    %2 = vector.broadcast %1 : vector<1x16xf32> to vector<16x16xf32>
    %3 = arith.mulf %0, %2 : vector<16x16xf32>
    %c0_3 = arith.constant 0 : index
    %c0_4 = arith.constant 0 : index
    %4 = vector.load %arg2[%c0_3, %c0_4] : memref<16x16xf32, #tpu.memory_space<vmem>>, vector<16x16xf32>
    %cst = arith.constant dense<0.000000e+00> : vector<16x16xf32>
    %5 = tpu.matmul %3, %4, %cst {dimension_numbers = #tpu.dot_dimension_numbers<[1], [0], [0], [1], [0, 0, 1, 1], [], []>} : vector<16x16xf32>, vector<16x16xf32>, vector<16x16xf32> -> vector<16x16xf32>
    %6 = arith.truncf %5 : vector<16x16xf32> to vector<16x16xbf16>
    %c0_5 = arith.constant 0 : index
    %c0_6 = arith.constant 0 : index
    %7 = vector.load %arg3[%c0_5, %c0_6] : memref<16x16xbf16, #tpu.memory_space<vmem>>, vector<16x16xbf16>
    tpu.vector_store %arg3[%c0_5, %c0_6], %6 {strides = array<i32>} : memref<16x16xbf16, #tpu.memory_space<vmem>>, vector<16x16xbf16>,
    return
  }
}

</mosaic_0001>

<bundles_post_ra>
// kernel: tpu_custom_call.1
= control target key start
LH: loop header
LB: loop body
LE: loop exit
PB: predicated region body
PF: predicated region fallthrough
CT: control target
= control target key end

     0   :  { %8 = vsyncpa [#allocation3], 0  ;;  %s334_s0 = inlined_call_operand.hbm [shape: f32[16,16], index: 0, kind: input, shape index: {}]   ;;  %s335_s1 = inlined_call_operand.vmem [shape: f32[1,16], index: 1, kind: input, shape index: {}]   ;;  %s336_s2 = inlined_call_operand.hbm [shape: f32[16,16], index: 2, kind: input, shape index: {}]   ;;  %s337_s3 = inlined_call_operand.hbm [shape: bf16[16,16], index: 3, kind: output, shape index: {}]  }
   0x1   :  { %9 = vsyncpa [#allocation6], 0 }
   0x2   :  { %10 = vsyncpa [#allocation4], 0  ;;  %s268_s12 = smov [#allocation2]   ;;  %s196_s16 = scalar_lea.hbm %s334_s0, 256 }
   0x3   :  { %s16_s13 = sshll.u32 %s268_s12, 4  ;;  %p197_p0 = scmp.ne.s32.totalorder %s334_s0, %s196_s16  ;;  %s17_s13 = int_to_ptr.vmem [resolvable:$true] %s16_s13 }
   0x4   :  { %p200_p1 = scmp.lt.u32.totalorder %s196_s16, %s334_s0 }
   0x6   :  { %p202_p2 = pnand %p200_p1, %p197_p0 }
   0x8   :  { %205 = shalt.err (!%p202_p2)
}
   0x9   :  { %s206_s21 = scalar_lea.vmem %s17_s13, 256  ;;  %p211_p4 = scmp.lt.s32.totalorder %s17_s13, %s17_s13 }
   0xa   :  { %p207_p3 = scmp.ne.s32.totalorder %s17_s13, %s206_s21  ;;  %p212_p5 = scmp.lt.s32.totalorder %s206_s21, %s206_s21 }
   0xc   :  { %p213_p6 = por %p212_p5, %p211_p4 }
   0xe   :  { %p214_p7 = pnand %p213_p6, %p207_p3 }
  0x10   :  { %217 = shalt.err (!%p214_p7)
}
  0x11   :  { %s269_s22 = smov 128   ;;  %s270_s23 = smov 8  }
  0x12   :  { %22 = dma.hbm_to_vmem [thread:$0]  %s334_s0, 256, %s17_s13, [#allocation3], %s269_s22, %s269_s22, %s270_s23  }
  0x13   :  { %s271_s26 = smov [#allocation5]   ;;  %s218_s30 = scalar_lea.hbm %s336_s2, 256 }
  0x14   :  { %s30_s27 = sshll.u32 %s271_s26, 4  ;;  %p219_p8 = scmp.ne.s32.totalorder %s336_s2, %s218_s30  ;;  %s31_s27 = int_to_ptr.vmem [resolvable:$true] %s30_s27 }
  0x15   :  { %p222_p9 = scmp.lt.u32.totalorder %s218_s30, %s336_s2 }
  0x17   :  { %p224_p10 = pnand %p222_p9, %p219_p8 }
  0x19   :  { %227 = shalt.err (!%p224_p10)
}
  0x1a   :  { %s228_s8 = scalar_lea.vmem %s31_s27, 256  ;;  %p233_p12 = scmp.lt.s32.totalorder %s31_s27, %s31_s27 }
  0x1b   :  { %p229_p11 = scmp.ne.s32.totalorder %s31_s27, %s228_s8  ;;  %p234_p13 = scmp.lt.s32.totalorder %s228_s8, %s228_s8 }
  0x1d   :  { %p235_p0 = por %p234_p13, %p233_p12 }
  0x1f   :  { %p236_p1 = pnand %p235_p0, %p229_p11 }
  0x21   :  { %239 = shalt.err (!%p236_p1)
}
  0x22   :  { %36 = dma.hbm_to_vmem [thread:$0]  %s336_s2, 256, %s31_s27, [#allocation6], %s269_s22, %s269_s22, %s270_s23  }
  0x23   :  { %262 = dma.done.wait [#allocation3], 256  }
  0x24   :  { %263 = vsyncadd [#allocation3], 4294967040 }
  0x25   :  { %264 = dma.done.wait [#allocation6], 256  }
  0x26   :  { %265 = vsyncadd [#allocation6], 4294967040  ;;  %v54_v0 = vld [vmem:[#allocation5] sm:$0xff]  ;;  %v55_v1 = vld [vmem:[#allocation5 + $0x8] sm:$0xff]  ;;  %vm56_vm0 = vcmask 130048   ;;  %s272_s2 = smov [#allocation7]  }
  0x27   :  { %v43_v2 = vld [vmem:[#allocation2] sm:$0xff]  ;;  %v185_v3 = vpack.c.bf16 %v55_v1, %v54_v0  ;;  %v44_v4 = vld [vmem:[#allocation2 + $0x8] sm:$0xff]  ;;  %s154_s12 = sshll.u32 %s272_s2, 4  ;;  %vm146_vm1 = vcmask 125952   ;;  %s155_s12 = int_to_ptr.vmem [resolvable:$true] %s154_s12 }
  0x28   :  { %v167_v5 = vld [vmem:[%s335_s1] ss:$0 sm:$0xff]  ;;  %s240_s13 = scalar_lea.vmem %s155_s12, 128  ;;  %p245_p3 = scmp.lt.s32.totalorder %s155_s12, %s155_s12 }
  0x29   :  { %v52_v6 = vmul.f32 %v167_v5, %v43_v2  ;;  %186 = vmatprep.subr.bf16.mxu0 %v185_v3  ;;  %v53_v7 = vmul.f32 %v167_v5, %v44_v4  ;;  %p241_p2 = scmp.ne.s32.totalorder %s155_s12, %s240_s13  ;;  %p246_p4 = scmp.lt.s32.totalorder %s240_s13, %s240_s13 }
  0x2a   :  { %188 = vmatpush3.bf16.msra.mxu0 %v185_v3 }
  0x2b   :  { %182 = vmatprep.mubr.msk.f32.mxu0 %vm56_vm0, %v52_v6  ;;  %p247_p5 = por %p246_p4, %p245_p3 }
  0x2d   :  { %183 = vmatmul.mubr.msk.f32.vlgmr.msra.gmra.mrb[0].mxu0 %vm56_vm0, %v53_v7  ;;  %p248_p6 = pnand %p247_p5, %p241_p2 }
 0x100   :  { %v184_v8 = vpop.f32.mrb[0].mxu0 }
 0x101   :  { %v173_v9 = vpack.c.bf16 %v184_v8, %v184_v8  ;;  %v129_v10 = vpop.f32.mrb[1].mxu0 }
 0x102   :  { %v172_v11 = vpack.c.bf16 %v129_v10, %v129_v10 }
 0x103   :  { %148 = vst.msk [vmem:[#allocation7 + $0x4] sm:$0xf] %vm146_vm1, %v173_v9 }
 0x104   :  { %147 = vst.msk [vmem:[#allocation7] sm:$0xf] %vm146_vm1, %v172_v11 }
 0x105   :  { %251 = shalt.err (!%p248_p6)
}
 0x106   :  { %s252_s15 = scalar_lea.hbm %s337_s3, 128 }
 0x107   :  { %p253_p7 = scmp.ne.s32.totalorder %s337_s3, %s252_s15  ;;  %p256_p8 = scmp.lt.u32.totalorder %s252_s15, %s337_s3 }
 0x109   :  { %p258_p9 = pnand %p256_p8, %p253_p7 }
 0x10b   :  { %261 = shalt.err (!%p258_p9)
}
 0x10c   :  { %s273_s20 = smov 64   ;;  %s274_s21 = smov 4  }
 0x10d   :  { %160 = dma.vmem_to_hbm [thread:$0]  %s155_s12, 128, %s337_s3, [#allocation4], %s273_s20, %s273_s20, %s274_s21  }
 0x10e   :  { %266 = dma.done.wait [#allocation4], 128  }
 0x10f   :  { %267 = vsyncadd [#allocation4], 4294967168 }
 0x110   :  { %164 = vsyncpa [#allocation3], 1 }
 0x111   :  { %165 = vsyncpa [#allocation6], 1 }
 0x112   :  { %166 = vsyncpa [#allocation4], 1 }

</bundles_post_ra>
